<compile_context>
chip_gen: v7x
topology: tpu7x:2x2x1
jax: 0.10.0
libtpu: 0.0.40
codegen_flags: <defaults>
</compile_context>

<pallas_src>
import functools
import math

import jax
import jax.numpy as jnp
from jax.experimental import pallas as pl
from jax.experimental.pallas import tpu as pltpu

_LANE = 128
_IO_PIPELINE_DEPTH = 2          # default Pallas double-buffering of grid-varying tiles


def _round_up(a, b):
    return ((a + b - 1) // b) * b


# ----------------------------- Pallas kernels ------------------------------ #
def _lrlinear_core(x_ref, vt_ref, ut_ref, o_ref, epilogue, residual):
    x = x_ref[...]                                                    # (TB, INF) native dtype
    # First matmul: MXU, f32 accumulation over inf (bf16-in / f32-acc when x,vt bf16).
    h = jnp.dot(x, vt_ref[...], preferred_element_type=jnp.float32)  # (TB, MID) f32
    # Keep the intermediate in f32 (do not throw away the f32 accumulation when the
    # weights are bf16); upcasting the tiny resident ut tile is free here.
    y = jnp.dot(h, ut_ref[...].astype(jnp.float32),
                preferred_element_type=jnp.float32)                  # (TB, OUTF) f32
    y = epilogue(y)                                                  # bias add or fused FMA
    y = jnp.maximum(y, 0.0)                                          # clamp(min=0)
    if residual:                                                     # init == 'id' path
        y = y + x.astype(jnp.float32)
    o_ref[...] = y.astype(o_ref.dtype)


def _kernel_affine(x_ref, vt_ref, ut_ref, scale_ref, shift_ref, o_ref, *, residual):
    # mode given: bias already folded into shift (shift' = bias*scale + shift)
    _lrlinear_core(x_ref, vt_ref, ut_ref, o_ref,
                   lambda y: y * scale_ref[...] + shift_ref[...], residual)


def _kernel_bias(x_ref, vt_ref, ut_ref, bias_ref, o_ref, *, residual):
    # mode is None: plain bias add, no scale/shift operands at all
    _lrlinear_core(x_ref, vt_ref, ut_ref, o_ref,
                   lambda y: y + bias_ref[...], residual)


# --------------------------- tiling / VMEM budget --------------------------- #
def _vmem_budget_bytes():
    """Generation-aware scoped-VMEM budget: physical capacity minus ~20% headroom."""
    cap = 64 * 2 ** 20                       # conservative fallback (v7x: 64 MiB / core)
    try:
        cap = int(getattr(pltpu.get_tpu_info(), "vmem_capacity_bytes", cap))
    except Exception:                        # query unavailable (e.g. interpret mode)
        pass
    return int(cap * 0.80)                   # ~51 MiB on v7x, ~102 MiB on v5e/v6e


# -------------------------------- wrapper ----------------------------------- #
def lrlinear_forward(x, vt, ut, bias, *, init='id', mode_scale=None, mode_shift=None,
                     mode=None, out_dtype=None):
    """Pallas-backed LRLinear.forward.

    x:    (B, inf)
    vt:   (inf, mid)   == v.T  (canonical pre-transposed layout)
    ut:   (mid, outf)  == u.T
    bias: (outf,)
    mode_scale / mode_shift: (n_modes, outf) or None ; mode: python int or None
    out_dtype: output dtype; defaults to x.dtype.  Passing bf16 for f32 inputs halves
               the writeback HBM traffic (useful on bandwidth-starved v5e) when the
               consumer tolerates it.
    """
    B, inf = x.shape
    inf_v, mid = vt.shape
    mid_u, outf = ut.shape
    assert inf_v == inf, f"Input wrong dim ({x.shape}, {inf_v})"
    assert mid_u == mid
    assert bias.shape == (outf,)

    residual = (init == 'id')
    if residual and outf != inf:
        raise ValueError("init='id' requires outf == inf for the residual add")
    out_dtype = x.dtype if out_dtype is None else jnp.dtype(out_dtype)

    # ----- epilogue operands (f32 rows); specialize on `mode` -----------------
    bias_row = bias.reshape(1, outf).astype(jnp.float32)
    if mode is not None:
        assert mode_scale is not None and mode_shift is not None, \
            "Linear got a mode but wasn't initialized for it"
        assert mode < mode_scale.shape[0], \
            f"Input mode {mode} outside of range {mode_scale.shape[0]}"
        scale_row = mode_scale[mode].reshape(1, outf).astype(jnp.float32)
        # Fold bias into the shift so the kernel epilogue is a single FMA.
        shift_row = bias_row * scale_row + mode_shift[mode].reshape(1, outf).astype(jnp.float32)
        vec_args = [scale_row, shift_row]
        kernel = functools.partial(_kernel_affine, residual=residual)
    else:
        vec_args = [bias_row]
        kernel = functools.partial(_kernel_bias, residual=residual)

    # ----- lane-dense padding: inf/outf -> multiples of 128 -------------------
    inf_p, outf_p = _round_up(inf, _LANE), _round_up(outf, _LANE)
    if inf_p != inf:
        x = jnp.pad(x, ((0, 0), (0, inf_p - inf)))
        vt = jnp.pad(vt, ((0, inf_p - inf), (0, 0)))
    if outf_p != outf:
        ut = jnp.pad(ut, ((0, 0), (0, outf_p - outf)))
        vec_args = [jnp.pad(v, ((0, 0), (0, outf_p - outf))) for v in vec_args]

    # ----- batch tile derived from the VMEM budget (accurate accounting) ------
    x_item = x.dtype.itemsize
    o_item = out_dtype.itemsize
    pack = max(32 // x_item, 32 // o_item, 8)      # sublane pack: 8/16/32 for f32/bf16/i8
    budget = _vmem_budget_bytes()
    # Residents (constant index_map) are fetched once but still get the default two
    # VMEM buffers each -> count them at that real footprint (see TODO at top).
    w_bytes = vt.dtype.itemsize * inf_p * mid + ut.dtype.itemsize * mid * outf_p
    vec_bytes = sum(int(v.size) * 4 for v in vec_args)
    resident = 2 * (w_bytes + vec_bytes)
    headroom = 2 * 2 ** 20                          # compiler / runtime scratch
    row_bytes = inf_p * x_item + outf_p * o_item    # one batch row of x-tile + out-tile
    avail = max(0, budget - resident - headroom)
    tb_budget = max(pack, (avail // (_IO_PIPELINE_DEPTH * row_bytes)) // pack * pack)
    # Keep >= 2 batch tiles whenever B allows so the "parallel" axis feeds both
    # v7x TensorCores (harmless extra grid step on single-core v5e/v6e).
    tb_split = pack if B <= pack else _round_up((B + 1) // 2, pack)
    tb = max(pack, min(tb_budget, tb_split))

    B_p = _round_up(B, tb)
    if B_p != B:
        x = jnp.pad(x, ((0, B_p - B), (0, 0)))
    grid = (pl.cdiv(B_p, tb),)

    # Limit derived from the same accounting that sized tb -> it can never clamp a
    # tile it did not size; floored so compiler-internal scratch has room, capped at
    # the per-generation budget.
    need = _IO_PIPELINE_DEPTH * tb * row_bytes + resident + headroom
    vmem_limit = int(min(budget, max(need, 32 * 2 ** 20)))

    x_spec = pl.BlockSpec((tb, inf_p), lambda i: (i, 0))
    vt_spec = pl.BlockSpec((inf_p, mid), lambda i: (0, 0))       # resident across grid
    ut_spec = pl.BlockSpec((mid, outf_p), lambda i: (0, 0))      # resident across grid
    vec_specs = [pl.BlockSpec((1, outf_p), lambda i: (0, 0)) for _ in vec_args]
    out_spec = pl.BlockSpec((tb, outf_p), lambda i: (i, 0))

    out_p = pl.pallas_call(
        kernel,
        out_shape=jax.ShapeDtypeStruct((B_p, outf_p), out_dtype),
        grid_spec=pltpu.PrefetchScalarGridSpec(
            num_scalar_prefetch=0,
            grid=grid,
            in_specs=[x_spec, vt_spec, ut_spec, *vec_specs],
            out_specs=out_spec,
        ),
        compiler_params=pltpu.CompilerParams(
            dimension_semantics=("parallel",),
            vmem_limit_bytes=vmem_limit,
        ),
    )(x, vt, ut, *vec_args)

    return out_p[:B, :outf]


# ------------------------ deterministic parameter init ---------------------- #
def make_params(key, inf, outf, rank, init='id', n_modes=None):
    """Weights directly in the kernel's canonical layout: vt=(inf,mid), ut=(mid,outf)."""
    mid = min(rank, inf)
    ku, kv = jax.random.split(key)
    if init == 'id':
        ut = jnp.zeros((mid, outf), jnp.float32)                   # u == 0
        vt = jax.random.normal(kv, (inf, mid), jnp.float32)        # v ~ N(0,1)
    elif init == 'xavier':
        # xavier_uniform: limit = gain * sqrt(6 / (fan_in + fan_out)); transpose-symmetric.
        gain_relu = math.sqrt(2.0)
        lim_u = gain_relu * math.sqrt(6.0 / (mid + outf))
        lim_v = 1.0 * math.sqrt(6.0 / (inf + mid))
        ut = jax.random.uniform(ku, (mid, outf), jnp.float32, -lim_u, lim_u)
        vt = jax.random.uniform(kv, (inf, mid), jnp.float32, -lim_v, lim_v)
    else:
        raise ValueError(f"Unrecognized initialization {init}")
    bias = jnp.zeros((outf,), jnp.float32)
    if n_modes is not None:
        mode_shift = jnp.zeros((n_modes, outf), jnp.float32)
        mode_scale = jnp.ones((n_modes, outf), jnp.float32)
    else:
        mode_shift = mode_scale = None
    return vt, ut, bias, mode_scale, mode_shift


# --------------------------------- reference --------------------------------- #
def _reference_forward(x, vt, ut, bias, *, init, mode_scale, mode_shift, mode):
    # Same math as (u @ (v @ x.T)).T + bias with u=ut.T, v=vt.T.  HIGHEST precision so
    # the f32 reference is not degraded by TPU default-matmul bf16 passes.
    hp = jax.lax.Precision.HIGHEST
    pre = jnp.matmul(jnp.matmul(x, vt, precision=hp), ut, precision=hp) + bias
    if mode is not None:
        pre = pre * mode_scale[mode] + mode_shift[mode]
    acts = jnp.maximum(pre, 0.0)
    return acts + x if init == 'id' else acts


# ----------------------------------- main ------------------------------------ #
if __name__ == "__main__":
    key = jax.random.PRNGKey(0)
    kx1, kx2, kp1, kp2, kp3, kpu = jax.random.split(key, 6)

    # Case 1: init='id' with a mode (residual + fused scale/shift epilogue).
    B1, inf1, outf1, rank1, n_modes = 8, 32, 32, 16, 3
    x1 = jax.random.normal(kx1, (B1, inf1), jnp.float32)
    vt1, ut1, b1, msc1, msh1 = make_params(kp1, inf1, outf1, rank1, init='id', n_modes=n_modes)
    ut1 = 0.05 * jax.random.normal(kpu, ut1.shape, jnp.float32)   # make every path non-trivial
    b1 = b1 + 0.1
    msc1 = msc1.at[1].set(1.5)
    msh1 = msh1.at[1].set(0.25)
    out_id = lrlinear_forward(x1, vt1, ut1, b1, init='id',
                              mode_scale=msc1, mode_shift=msh1, mode=1)
    ref_id = _reference_forward(x1, vt1, ut1, b1, init='id',
                                mode_scale=msc1, mode_shift=msh1, mode=1)

    # Case 2: init='xavier', no mode; non-128 feature dims and a multi-tile batch
    # (exercises lane padding, batch padding, and the >=2-tile parallel grid).
    B2, inf2, outf2, rank2 = 300, 160, 160, 24
    x2 = jax.random.normal(kx2, (B2, inf2), jnp.float32)
    vt2, ut2, b2, _, _ = make_params(kp2, inf2, outf2, rank2, init='xavier')
    b2 = b2 + 0.1
    out_xa = lrlinear_forward(x2, vt2, ut2, b2, init='xavier')
    ref_xa = _reference_forward(x2, vt2, ut2, b2, init='xavier',
                                mode_scale=None, mode_shift=None, mode=None)

    # Case 3: bf16 activations + weights; intermediate stays f32 inside the kernel.
    vt3, ut3, b3, _, _ = make_params(kp3, inf1, outf1, rank1, init='xavier')
    b3 = b3 + 0.05
    out_bf = lrlinear_forward(x1.astype(jnp.bfloat16),
                              vt3.astype(jnp.bfloat16),
                              ut3.astype(jnp.bfloat16),
                              b3, init='xavier')
    ref_bf = _reference_forward(x1, vt3, ut3, b3, init='xavier',
                                mode_scale=None, mode_shift=None, mode=None)

    jax.block_until_ready((out_id, out_xa, out_bf))

    assert out_id.shape == (B1, outf1)
    assert out_xa.shape == (B2, outf2)
    assert out_bf.shape == (B1, outf1)
    assert jnp.allclose(out_id, ref_id, atol=1e-3, rtol=1e-3)
    assert jnp.allclose(out_xa, ref_xa, atol=1e-3, rtol=1e-3)
    assert jnp.allclose(out_bf.astype(jnp.float32), ref_bf, atol=5e-2, rtol=5e-2)
    print("KERNEL_OK")
</pallas_src>

<mosaic_0001>
module attributes {stable_mosaic.version = 11 : i64} {
  func.func @_kernel_affine(%arg0: i32, %arg1: memref<8x128xf32, #tpu.memory_space<vmem>>, %arg2: memref<128x16xf32, #tpu.memory_space<vmem>>, %arg3: memref<16x128xf32, #tpu.memory_space<vmem>>, %arg4: memref<1x128xf32, #tpu.memory_space<vmem>>, %arg5: memref<1x128xf32, #tpu.memory_space<vmem>>, %arg6: memref<8x128xf32, #tpu.memory_space<vmem>>) attributes {dimension_semantics = [#tpu.dimension_semantics<parallel>], iteration_bounds = array<i64: 1>, scalar_prefetch = 0 : i64, scratch_operands = 0 : i64, tpu.core_type = #tpu.core_type<tc>, window_params = [{transform_indices = @transform_0, window_bounds = array<i64: 8, 128>}, {pipeline_mode = #tpu.pipeline_mode<synchronous>, transform_indices = @transform_1, window_bounds = array<i64: 128, 16>}, {pipeline_mode = #tpu.pipeline_mode<synchronous>, transform_indices = @transform_2, window_bounds = array<i64: 16, 128>}, {pipeline_mode = #tpu.pipeline_mode<synchronous>, transform_indices = @transform_3, window_bounds = array<i64: 1, 128>}, {pipeline_mode = #tpu.pipeline_mode<synchronous>, transform_indices = @transform_4, window_bounds = array<i64: 1, 128>}, {transform_indices = @transform_5, window_bounds = array<i64: 8, 128>}]} {
    %c0 = arith.constant 0 : index
    %c0_0 = arith.constant 0 : index
    %0 = vector.load %arg1[%c0, %c0_0] : memref<8x128xf32, #tpu.memory_space<vmem>>, vector<8x128xf32>
    %c0_1 = arith.constant 0 : index
    %c0_2 = arith.constant 0 : index
    %1 = vector.load %arg2[%c0_1, %c0_2] : memref<128x16xf32, #tpu.memory_space<vmem>>, vector<128x16xf32>
    %cst = arith.constant dense<0.000000e+00> : vector<8x16xf32>
    %2 = tpu.matmul %0, %1, %cst {dimension_numbers = #tpu.dot_dimension_numbers<[1], [0], [0], [1], [0, 0, 1, 1], [], []>} : vector<8x128xf32>, vector<128x16xf32>, vector<8x16xf32> -> vector<8x16xf32>
    %c0_3 = arith.constant 0 : index
    %c0_4 = arith.constant 0 : index
    %3 = vector.load %arg3[%c0_3, %c0_4] : memref<16x128xf32, #tpu.memory_space<vmem>>, vector<16x128xf32>
    %cst_5 = arith.constant dense<0.000000e+00> : vector<8x128xf32>
    %4 = tpu.matmul %2, %3, %cst_5 {dimension_numbers = #tpu.dot_dimension_numbers<[1], [0], [0], [1], [0, 0, 1, 1], [], []>} : vector<8x16xf32>, vector<16x128xf32>, vector<8x128xf32> -> vector<8x128xf32>
    %c0_6 = arith.constant 0 : index
    %c0_7 = arith.constant 0 : index
    %5 = vector.load %arg4[%c0_6, %c0_7] : memref<1x128xf32, #tpu.memory_space<vmem>>, vector<1x128xf32>
    %6 = vector.broadcast %5 : vector<1x128xf32> to vector<8x128xf32>
    %7 = arith.mulf %4, %6 : vector<8x128xf32>
    %c0_8 = arith.constant 0 : index
    %c0_9 = arith.constant 0 : index
    %8 = vector.load %arg5[%c0_8, %c0_9] : memref<1x128xf32, #tpu.memory_space<vmem>>, vector<1x128xf32>
    %9 = vector.broadcast %8 : vector<1x128xf32> to vector<8x128xf32>
    %10 = arith.addf %7, %9 : vector<8x128xf32>
    %cst_10 = arith.constant 0.000000e+00 : f32
    %11 = vector.broadcast %cst_10 : f32 to vector<8x128xf32>
    %12 = arith.maximumf %10, %11 : vector<8x128xf32>
    %13 = arith.addf %12, %0 : vector<8x128xf32>
    %c0_11 = arith.constant 0 : index
    %c0_12 = arith.constant 0 : index
    %14 = vector.load %arg6[%c0_11, %c0_12] : memref<8x128xf32, #tpu.memory_space<vmem>>, vector<8x128xf32>
    tpu.vector_store %arg6[%c0_11, %c0_12], %13 {strides = array<i32>} : memref<8x128xf32, #tpu.memory_space<vmem>>, vector<8x128xf32>,
    return
  }
  func.func @transform_0(%arg0: i32) -> (i32, i32) {
    %c0_i32 = arith.constant 0 : i32
    %c0_i32_0 = arith.constant 0 : i32
    return %arg0, %c0_i32 : i32, i32
  }
  func.func @transform_1(%arg0: i32) -> (i32, i32) {
    %c0_i32 = arith.constant 0 : i32
    %c0_i32_0 = arith.constant 0 : i32
    %c0_i32_1 = arith.constant 0 : i32
    return %c0_i32, %c0_i32_0 : i32, i32
  }
  func.func @transform_2(%arg0: i32) -> (i32, i32) {
    %c0_i32 = arith.constant 0 : i32
    %c0_i32_0 = arith.constant 0 : i32
    %c0_i32_1 = arith.constant 0 : i32
    return %c0_i32, %c0_i32_0 : i32, i32
  }
  func.func @transform_3(%arg0: i32) -> (i32, i32) {
    %c0_i32 = arith.constant 0 : i32
    %c0_i32_0 = arith.constant 0 : i32
    %c0_i32_1 = arith.constant 0 : i32
    return %c0_i32, %c0_i32_0 : i32, i32
  }
  func.func @transform_4(%arg0: i32) -> (i32, i32) {
    %c0_i32 = arith.constant 0 : i32
    %c0_i32_0 = arith.constant 0 : i32
    %c0_i32_1 = arith.constant 0 : i32
    return %c0_i32, %c0_i32_0 : i32, i32
  }
  func.func @transform_5(%arg0: i32) -> (i32, i32) {
    %c0_i32 = arith.constant 0 : i32
    %c0_i32_0 = arith.constant 0 : i32
    return %arg0, %c0_i32 : i32, i32
  }
}

</mosaic_0001>

<bundles_post_ra>
// kernel: tpu_custom_call.1
= control target key start
LH: loop header
LB: loop body
LE: loop exit
PB: predicated region body
PF: predicated region fallthrough
CT: control target
= control target key end

     0   :  { %v337_v3 = vmov 0.0|0.0   ;;  %vm338_vm0 = vmmov 0   ;;  %v339_v6 = vmov 0.0   ;;  %s446_s0 = inlined_call_operand.vmem [shape: f32[8,128], index: 0, kind: input, shape index: {}]   ;;  %s447_s1 = inlined_call_operand.vmem [shape: f32[128,16], index: 1, kind: input, shape index: {}]   ;;  %s448_s2 = inlined_call_operand.vmem [shape: f32[16,128], index: 2, kind: input, shape index: {}]   ;;  %s449_s3 = inlined_call_operand.vmem [shape: f32[1,128], index: 3, kind: input, shape index: {}]   ;;  %s450_s4 = inlined_call_operand.vmem [shape: f32[1,128], index: 4, kind: input, shape index: {}]   ;;  %s451_s5 = inlined_call_operand.hbm [shape: f32[8,128], index: 5, kind: output, shape index: {}]  }
   0x1   :  { %v22_v0 = vld [vmem:[%s447_s1] sm:$0xff]  ;;  %v23_v1 = vld [vmem:[%s447_s1 + $0x8] sm:$0xff]  ;;  %v24_v2 = vld [vmem:[%s447_s1 + $0x10] sm:$0xff]  ;;  %282 = vmatprep.subr.bf16.mxu0 %v337_v3  ;;  %272 = vmatprep.mubr.msk.f32.mxu0 %vm338_vm0, %v339_v6 }
   0x2   :  { %v283_v4 = vpack.c.bf16 %v23_v1, %v22_v0  ;;  %v25_v5 = vld [vmem:[%s447_s1 + $0x18] sm:$0xff]  ;;  %306 = vmatprep.subr.bf16.mxu1 %v337_v3  ;;  %279 = vmatprep.mubr.msk.f32.mxu1 %vm338_vm0, %v339_v6  ;;  %v26_v8 = vld [vmem:[%s447_s1 + $0x20] sm:$0xff]  ;;  %v27_v9 = vld [vmem:[%s447_s1 + $0x28] sm:$0xff] }
   0x3   :  { %v286_v7 = vpack.c.bf16 %v25_v5, %v24_v2  ;;  %v108_v10 = vld [vmem:[%s448_s2] sm:$0xff]  ;;  %v109_v11 = vld [vmem:[%s448_s2 + $0x8] sm:$0xff] }
   0x4   :  { %284 = vmatpush3.bf16.msra.mxu0 %v283_v4 }
   0x5   :  { %285 = vmatprep.subr.bf16.mxu0 %v337_v3 }
   0x6   :  { %10 = vsyncpa [#allocation3], 0  ;;  %v289_v12 = vpack.c.bf16 %v27_v9, %v26_v8  ;;  %v307_v13 = vpack.c.bf16 %v109_v11, %v108_v10  ;;  %v28_v14 = vld [vmem:[%s447_s1 + $0x30] sm:$0xff]  ;;  %v29_v15 = vld [vmem:[%s447_s1 + $0x38] sm:$0xff]  ;;  %vm110_vm1 = vcmask 130048   ;;  %s340_s8 = smov [#allocation2]  }
   0x7   :  { %v292_v16 = vpack.c.bf16 %v29_v15, %v28_v14  ;;  %v30_v17 = vld [vmem:[%s447_s1 + $0x40] sm:$0xff]  ;;  %v31_v18 = vld [vmem:[%s447_s1 + $0x48] sm:$0xff]  ;;  %v32_v20 = vld [vmem:[%s447_s1 + $0x50] sm:$0xff]  ;;  %s209_s9 = sshll.u32 %s340_s8, 4  ;;  %s210_s9 = int_to_ptr.vmem [resolvable:$true] %s209_s9 }
   0x8   :  { %287 = vmatpush3.bf16.msra.mxu0 %v286_v7  ;;  %308 = vmatpush3.bf16.msra.mxu1 %v307_v13  ;;  %v295_v19 = vpack.c.bf16 %v31_v18, %v30_v17  ;;  %v33_v21 = vld [vmem:[%s447_s1 + $0x58] sm:$0xff]  ;;  %v34_v23 = vld [vmem:[%s447_s1 + $0x60] sm:$0xff]  ;;  %v35_v24 = vld [vmem:[%s447_s1 + $0x68] sm:$0xff]  ;;  %p318_p1 = scmp.lt.s32.totalorder %s210_s9, %s210_s9 }
   0x9   :  { %288 = vmatprep.subr.bf16.mxu0 %v337_v3  ;;  %v298_v22 = vpack.c.bf16 %v33_v21, %v32_v20  ;;  %v301_v25 = vpack.c.bf16 %v35_v24, %v34_v23  ;;  %v36_v26 = vld [vmem:[%s447_s1 + $0x70] sm:$0xff]  ;;  %v37_v27 = vld [vmem:[%s447_s1 + $0x78] sm:$0xff]  ;;  %v21_v29 = vld [vmem:[%s446_s0] sm:$0xff]  ;;  %s313_s0 = scalar_lea.vmem %s210_s9, 128 }
   0xa   :  { %v304_v28 = vpack.c.bf16 %v37_v27, %v36_v26  ;;  %v218_v32 = vld [vmem:[%s449_s3] ss:$0 sm:$0xff]  ;;  %p314_p0 = scmp.ne.s32.totalorder %s210_s9, %s313_s0  ;;  %p319_p2 = scmp.lt.s32.totalorder %s313_s0, %s313_s0 }
   0xb   :  { %v219_v34 = vld [vmem:[%s450_s4] ss:$0 sm:$0xff] }
   0xc   :  { %290 = vmatpush3.bf16.msra.mxu0 %v289_v12  ;;  %p320_p3 = por %p319_p2, %p318_p1 }
   0xd   :  { %291 = vmatprep.subr.bf16.mxu0 %v337_v3 }
   0xe   :  { %p321_p4 = pnand %p320_p3, %p314_p0 }
  0x10   :  { %293 = vmatpush3.bf16.msra.mxu0 %v292_v16 }
  0x11   :  { %294 = vmatprep.subr.bf16.mxu0 %v337_v3 }
  0x14   :  { %296 = vmatpush3.bf16.msra.mxu0 %v295_v19 }
  0x15   :  { %297 = vmatprep.subr.bf16.mxu0 %v337_v3 }
  0x18   :  { %299 = vmatpush3.bf16.msra.mxu0 %v298_v22 }
  0x19   :  { %300 = vmatprep.subr.bf16.mxu0 %v337_v3 }
  0x1c   :  { %302 = vmatpush3.bf16.msra.mxu0 %v301_v25 }
  0x1d   :  { %303 = vmatprep.subr.bf16.mxu0 %v337_v3 }
  0x20   :  { %305 = vmatpush3.bf16.msra.mxu0 %v304_v28 }
  0x23   :  { %273 = vmatmul.mubr.f32.vlgmr.msra.gmra.mrb[0].mxu0 %v21_v29 }
  0xf6   :  { %v104_v30 = vpop.f32.mrb[0].mxu0 }
  0xf7   :  { %v274_v31 = vpop.f32.mrb[1].mxu0  ;;  %280 = vmatmul.mubr.msk.f32.vlgmr.msra.gmra.mrb[0].mxu1 %vm110_vm1, %v104_v30 }
 0x1ca   :  { %v180_v33 = vpop.f32.mrb[0].mxu1 }
 0x1cb   :  { %v191_v35 = vmul.f32 %v218_v32, %v180_v33  ;;  %v281_v36 = vpop.f32.mrb[1].mxu1 }
 0x1cd   :  { %v199_v37 = vadd.f32 %v219_v34, %v191_v35 }
 0x1cf   :  { %v200_v38 = vmax.f32 %v199_v37, 0.0 }
 0x1d1   :  { %v201_v39 = vadd.f32 %v200_v38, %v21_v29 }
 0x1d3   :  { %202 = vst [vmem:[#allocation2] sm:$0xff] %v201_v39 }
 0x1d4   :  { %324 = shalt.err (!%p321_p4)
}
 0x1d5   :  { %s325_s4 = scalar_lea.hbm %s451_s5, 128 }
 0x1d6   :  { %p326_p5 = scmp.ne.s32.totalorder %s451_s5, %s325_s4  ;;  %p329_p6 = scmp.lt.u32.totalorder %s325_s4, %s451_s5 }
 0x1d8   :  { %p331_p7 = pnand %p329_p6, %p326_p5 }
 0x1da   :  { %334 = shalt.err (!%p331_p7)
}
 0x1db   :  { %212 = dma.vmem_to_hbm [thread:$0]  %s210_s9, 128, %s451_s5, [#allocation3]  }
 0x1dc   :  { %335 = dma.done.wait [#allocation3], 128  }
 0x1dd   :  { %336 = vsyncadd [#allocation3], 4294967168 }
 0x1de   :  { %216 = vsyncpa [#allocation3], 1 }

</bundles_post_ra>
